<compile_context>
chip_gen: v5e
topology: v5e:2x2
jax: 0.10.0
libtpu: 0.0.40
codegen_flags: <defaults>
</compile_context>

<pallas_src>
import jax
import jax.numpy as jnp
from jax.experimental import pallas as pl
from jax.experimental.pallas import tpu as pltpu


def _round_up(x, m):
    return ((x + m - 1) // m) * m


def _temporal_union_kernel(f_ref, l_ref, tf_ref, tl_ref,
                           w1f_a_ref, w1f_b_ref, b1f_ref, w2f_ref, b2f_ref,
                           w1t_a_ref, w1t_b_ref, b1t_ref, w2t_ref, b2t_ref,
                           feat_ref, logic_ref, tfeat_ref, tlogic_ref):
    """One batch-tile of the TemporalUnion attention / min / max reduction."""
    n, tm, d = f_ref.shape            # static: (N, tile_m, dim)

    def attention_weighted_sum(x_ref, g_ref, w1a_ref, w1b_ref, b1_ref,
                               w2_ref, b2_ref):
        x3 = x_ref[...]               # (N, TM, D) bf16
        g3 = g_ref[...]               # (N, TM, D) bf16
        # Flatten the branch axis into the matmul M dimension (layout-free
        # leading-dim merge: tm is a multiple of the sublane tile).
        x2 = x3.reshape(n * tm, d)
        g2 = g3.reshape(n * tm, d)

        # cat([x, g], -1) @ W1  ==  x @ W1[:D] + g @ W1[D:]
        # bf16 operands, f32 accumulation on the MXU; single bias add.
        h = (jnp.dot(x2, w1a_ref[...], preferred_element_type=jnp.float32)
             + jnp.dot(g2, w1b_ref[...], preferred_element_type=jnp.float32)
             + b1_ref[...])
        h = jnp.maximum(h, 0.0).astype(x2.dtype)          # relu, back to bf16
        s = (jnp.dot(h, w2_ref[...], preferred_element_type=jnp.float32)
             + b2_ref[...])                               # (N*TM, D) f32
        s = s.reshape(n, tm, d)

        # Softmax over the branch axis (f32, per (row, lane); N is tiny so
        # these are just a few full-tile VPU/EUP ops).
        m = jnp.max(s, axis=0, keepdims=True)
        e = jnp.exp(s - m)                                 # EUP
        inv = pl.reciprocal(jnp.sum(e, axis=0), approx=True)   # EUP vrcp
        # Factored weighted sum: one multiply by inv, not one per branch.
        return jnp.sum(e * x3.astype(jnp.float32), axis=0) * inv

    feat_ref[...] = attention_weighted_sum(
        f_ref, l_ref, w1f_a_ref, w1f_b_ref, b1f_ref, w2f_ref, b2f_ref
    ).astype(feat_ref.dtype)

    tfeat_ref[...] = attention_weighted_sum(
        tf_ref, tl_ref, w1t_a_ref, w1t_b_ref, b1t_ref, w2t_ref, b2t_ref
    ).astype(tfeat_ref.dtype)

    # logic = min over branches, time_logic = max over branches (exact in bf16)
    logic_ref[...] = jnp.min(l_ref[...], axis=0).astype(logic_ref.dtype)
    tlogic_ref[...] = jnp.max(tl_ref[...], axis=0).astype(tlogic_ref.dtype)


def temporal_union_pallas(feature, logic, time_feature, time_logic, params,
                          *, tile_m=512, vmem_limit_bytes=None):
    """feature/logic/time_feature/time_logic: (N, B, dim). Returns bf16 outs."""
    N, B, D = feature.shape
    assert logic.shape == (N, B, D)
    assert time_feature.shape == (N, B, D)
    assert time_logic.shape == (N, B, D)

    bf16 = jnp.bfloat16
    # bf16 for the streamed activations / MXU operands (HBM traffic ~halved).
    feature = feature.astype(bf16)
    logic = logic.astype(bf16)
    time_feature = time_feature.astype(bf16)
    time_logic = time_logic.astype(bf16)

    # First-layer weights split into their two row halves so the lane concat
    # is never materialised.  Weights bf16 (MXU operands), biases f32.
    w1f = params["w1f"].astype(bf16)          # (2D, D)
    w1t = params["w1t"].astype(bf16)          # (2D, D)
    w1f_a, w1f_b = w1f[:D], w1f[D:]
    w1t_a, w1t_b = w1t[:D], w1t[D:]
    w2f = params["w2f"].astype(bf16)
    w2t = params["w2t"].astype(bf16)
    b1f = params["b1f"].astype(jnp.float32)
    b2f = params["b2f"].astype(jnp.float32)
    b1t = params["b1t"].astype(jnp.float32)
    b2t = params["b2t"].astype(jnp.float32)

    # Batch tiling: balanced, 16-row-aligned tiles, NO jnp.pad (a ragged last
    # block is handled by Pallas' masked boundary reads/writes).  Force >= 2
    # grid steps for medium/large batches so a v7x megacore can use both TCs.
    n_tiles = max(1, pl.cdiv(B, tile_m))
    if n_tiles == 1 and B >= 64:
        n_tiles = 2
    tm = min(_round_up(pl.cdiv(B, n_tiles), 16), B)
    grid = (pl.cdiv(B, tm),)

    x_spec = pl.BlockSpec((N, tm, D), lambda i: (0, i, 0))
    w_spec = pl.BlockSpec((D, D), lambda i: (0, 0))        # resident weights
    b_spec = pl.BlockSpec((1, D), lambda i: (0, 0))        # resident biases
    o_spec = pl.BlockSpec((tm, D), lambda i: (i, 0))       # lane-dense outputs

    out_sd = jax.ShapeDtypeStruct((B, D), bf16)

    cost = pl.CostEstimate(
        flops=int(12 * N * B * D * D),                     # 2 MLPs x 3 matmuls
        transcendentals=int(2 * N * B * D),                # softmax exp
        bytes_accessed=int(2 * (4 * N * B * D)             # bf16 inputs
                           + 2 * (6 * D * D) + 4 * (4 * D)  # weights/biases
                           + 2 * (4 * B * D)),             # bf16 outputs
    )

    fn = pl.pallas_call(
        _temporal_union_kernel,
        out_shape=(out_sd, out_sd, out_sd, out_sd),
        grid_spec=pltpu.PrefetchScalarGridSpec(
            num_scalar_prefetch=0,
            grid=grid,
            in_specs=[x_spec, x_spec, x_spec, x_spec,
                      w_spec, w_spec, b_spec, w_spec, b_spec,
                      w_spec, w_spec, b_spec, w_spec, b_spec],
            out_specs=[o_spec, o_spec, o_spec, o_spec],
        ),
        compiler_params=pltpu.CompilerParams(
            dimension_semantics=("parallel",),
            vmem_limit_bytes=vmem_limit_bytes),
        cost_estimate=cost,
    )

    return fn(feature, logic, time_feature, time_logic,
              w1f_a, w1f_b, b1f, w2f, b2f,
              w1t_a, w1t_b, b1t, w2t, b2t)


def init_params(key, dim):
    """Weights stored transposed (in, out) so the kernel computes x @ W."""
    ks = jax.random.split(key, 8)

    def xavier(k, fan_in, fan_out):
        lim = jnp.sqrt(6.0 / (fan_in + fan_out))
        return jax.random.uniform(k, (fan_in, fan_out), jnp.float32, -lim, lim)

    def bias(k, fan_in, out):
        b = 1.0 / jnp.sqrt(jnp.float32(fan_in))
        return jax.random.uniform(k, (1, out), jnp.float32, -b, b)

    return {
        "w1f": xavier(ks[0], 2 * dim, dim), "b1f": bias(ks[1], 2 * dim, dim),
        "w2f": xavier(ks[2], dim, dim),     "b2f": bias(ks[3], dim, dim),
        "w1t": xavier(ks[4], 2 * dim, dim), "b1t": bias(ks[5], 2 * dim, dim),
        "w2t": xavier(ks[6], dim, dim),     "b2t": bias(ks[7], dim, dim),
    }


def _reference_forward(feature, logic, time_feature, time_logic, params):
    """Pure-f32 JAX reference mirroring the PyTorch forward."""
    logits = jnp.concatenate([feature, logic], axis=-1)
    attn = jax.nn.softmax(
        jax.nn.relu(logits @ params["w1f"] + params["b1f"]) @ params["w2f"]
        + params["b2f"], axis=0)
    feat = jnp.sum(attn * feature, axis=0)

    logits = jnp.concatenate([time_feature, time_logic], axis=-1)
    attn = jax.nn.softmax(
        jax.nn.relu(logits @ params["w1t"] + params["b1t"]) @ params["w2t"]
        + params["b2t"], axis=0)
    tfeat = jnp.sum(attn * time_feature, axis=0)

    return (feat, jnp.min(logic, axis=0), tfeat, jnp.max(time_logic, axis=0))


def _reference_matched(feature, logic, time_feature, time_logic, params):
    """Reference using the kernel's mixed precision (bf16 operands, f32 acc)."""
    bf16, f32 = jnp.bfloat16, jnp.float32

    def attn_branch(x, g, w1, b1, w2, b2):
        N, B, D = x.shape
        xb = x.astype(bf16).reshape(N * B, D)
        gb = g.astype(bf16).reshape(N * B, D)
        w1 = w1.astype(bf16)
        w2 = w2.astype(bf16)
        h = (jnp.dot(xb, w1[:D], preferred_element_type=f32)
             + jnp.dot(gb, w1[D:], preferred_element_type=f32)
             + b1.astype(f32))
        h = jnp.maximum(h, 0.0).astype(bf16)
        s = (jnp.dot(h, w2, preferred_element_type=f32)
             + b2.astype(f32)).reshape(N, B, D)
        attn = jax.nn.softmax(s, axis=0)
        return jnp.sum(attn * x.astype(bf16).astype(f32), axis=0)

    feat = attn_branch(feature, logic, params["w1f"], params["b1f"],
                       params["w2f"], params["b2f"])
    tfeat = attn_branch(time_feature, time_logic, params["w1t"], params["b1t"],
                        params["w2t"], params["b2t"])
    lmin = jnp.min(logic.astype(bf16).astype(f32), axis=0)
    tmax = jnp.max(time_logic.astype(bf16).astype(f32), axis=0)
    return feat, lmin, tfeat, tmax


if __name__ == "__main__":
    dim = 128          # lane-aligned feature size (multiple of 128)
    n_union = 2        # number of union operands stacked on axis 0
    batch = 16

    key = jax.random.PRNGKey(0)
    pkey, xkey = jax.random.split(key)
    params = init_params(pkey, dim)

    ks = jax.random.split(xkey, 4)
    feature = jax.random.normal(ks[0], (n_union, batch, dim), jnp.float32)
    logic = jax.nn.sigmoid(jax.random.normal(ks[1], (n_union, batch, dim),
                                             jnp.float32))
    time_feature = jax.random.normal(ks[2], (n_union, batch, dim), jnp.float32)
    time_logic = jax.nn.sigmoid(jax.random.normal(ks[3], (n_union, batch, dim),
                                                  jnp.float32))

    out = temporal_union_pallas(feature, logic, time_feature, time_logic,
                                params)
    out = jax.block_until_ready(out)
    feat, lmin, tfeat, tmax = [o.astype(jnp.float32) for o in out]

    # Tight check against a reference that uses the same bf16/f32 mixed math.
    rfeat, rlmin, rtfeat, rtmax = _reference_matched(
        feature, logic, time_feature, time_logic, params)
    assert feat.shape == (batch, dim) and tfeat.shape == (batch, dim)
    assert float(jnp.max(jnp.abs(feat - rfeat))) < 4e-2
    assert float(jnp.max(jnp.abs(tfeat - rtfeat))) < 4e-2
    assert float(jnp.max(jnp.abs(lmin - rlmin))) < 1e-5
    assert float(jnp.max(jnp.abs(tmax - rtmax))) < 1e-5

    # Loose sanity check against the pure-f32 PyTorch-equivalent forward
    # (difference is bf16 operand / output rounding).
    ffeat, flmin, ftfeat, ftmax = _reference_forward(
        feature, logic, time_feature, time_logic, params)
    assert float(jnp.max(jnp.abs(feat - ffeat))) < 0.25
    assert float(jnp.max(jnp.abs(tfeat - ftfeat))) < 0.25
    assert float(jnp.max(jnp.abs(lmin - flmin))) < 1e-2
    assert float(jnp.max(jnp.abs(tmax - ftmax))) < 1e-2

    print("KERNEL_OK")
</pallas_src>

<mosaic_0001>
module attributes {stable_mosaic.version = 11 : i64} {
  func.func @_temporal_union_kernel(%arg0: i32, %arg1: memref<2x16x128xbf16, #tpu.memory_space<vmem>>, %arg2: memref<2x16x128xbf16, #tpu.memory_space<vmem>>, %arg3: memref<2x16x128xbf16, #tpu.memory_space<vmem>>, %arg4: memref<2x16x128xbf16, #tpu.memory_space<vmem>>, %arg5: memref<128x128xbf16, #tpu.memory_space<vmem>>, %arg6: memref<128x128xbf16, #tpu.memory_space<vmem>>, %arg7: memref<1x128xf32, #tpu.memory_space<vmem>>, %arg8: memref<128x128xbf16, #tpu.memory_space<vmem>>, %arg9: memref<1x128xf32, #tpu.memory_space<vmem>>, %arg10: memref<128x128xbf16, #tpu.memory_space<vmem>>, %arg11: memref<128x128xbf16, #tpu.memory_space<vmem>>, %arg12: memref<1x128xf32, #tpu.memory_space<vmem>>, %arg13: memref<128x128xbf16, #tpu.memory_space<vmem>>, %arg14: memref<1x128xf32, #tpu.memory_space<vmem>>, %arg15: memref<16x128xbf16, #tpu.memory_space<vmem>>, %arg16: memref<16x128xbf16, #tpu.memory_space<vmem>>, %arg17: memref<16x128xbf16, #tpu.memory_space<vmem>>, %arg18: memref<16x128xbf16, #tpu.memory_space<vmem>>) attributes {dimension_semantics = [#tpu.dimension_semantics<parallel>], iteration_bounds = array<i64: 1>, scalar_prefetch = 0 : i64, scratch_operands = 0 : i64, tpu.core_type = #tpu.core_type<tc>, window_params = [{transform_indices = @transform_0, window_bounds = array<i64: 2, 16, 128>}, {transform_indices = @transform_1, window_bounds = array<i64: 2, 16, 128>}, {transform_indices = @transform_2, window_bounds = array<i64: 2, 16, 128>}, {transform_indices = @transform_3, window_bounds = array<i64: 2, 16, 128>}, {pipeline_mode = #tpu.pipeline_mode<synchronous>, transform_indices = @transform_4, window_bounds = array<i64: 128, 128>}, {pipeline_mode = #tpu.pipeline_mode<synchronous>, transform_indices = @transform_5, window_bounds = array<i64: 128, 128>}, {pipeline_mode = #tpu.pipeline_mode<synchronous>, transform_indices = @transform_6, window_bounds = array<i64: 1, 128>}, {pipeline_mode = #tpu.pipeline_mode<synchronous>, transform_indices = @transform_7, window_bounds = array<i64: 128, 128>}, {pipeline_mode = #tpu.pipeline_mode<synchronous>, transform_indices = @transform_8, window_bounds = array<i64: 1, 128>}, {pipeline_mode = #tpu.pipeline_mode<synchronous>, transform_indices = @transform_9, window_bounds = array<i64: 128, 128>}, {pipeline_mode = #tpu.pipeline_mode<synchronous>, transform_indices = @transform_10, window_bounds = array<i64: 128, 128>}, {pipeline_mode = #tpu.pipeline_mode<synchronous>, transform_indices = @transform_11, window_bounds = array<i64: 1, 128>}, {pipeline_mode = #tpu.pipeline_mode<synchronous>, transform_indices = @transform_12, window_bounds = array<i64: 128, 128>}, {pipeline_mode = #tpu.pipeline_mode<synchronous>, transform_indices = @transform_13, window_bounds = array<i64: 1, 128>}, {transform_indices = @transform_14, window_bounds = array<i64: 16, 128>}, {transform_indices = @transform_15, window_bounds = array<i64: 16, 128>}, {transform_indices = @transform_16, window_bounds = array<i64: 16, 128>}, {transform_indices = @transform_17, window_bounds = array<i64: 16, 128>}]} {
    %c0 = arith.constant 0 : index
    %c0_0 = arith.constant 0 : index
    %c0_1 = arith.constant 0 : index
    %0 = vector.load %arg1[%c0, %c0_0, %c0_1] : memref<2x16x128xbf16, #tpu.memory_space<vmem>>, vector<2x16x128xbf16>
    %c0_2 = arith.constant 0 : index
    %c0_3 = arith.constant 0 : index
    %c0_4 = arith.constant 0 : index
    %1 = vector.load %arg2[%c0_2, %c0_3, %c0_4] : memref<2x16x128xbf16, #tpu.memory_space<vmem>>, vector<2x16x128xbf16>
    %2 = vector.shape_cast %0 : vector<2x16x128xbf16> to vector<32x128xbf16>
    %3 = vector.shape_cast %1 : vector<2x16x128xbf16> to vector<32x128xbf16>
    %c0_5 = arith.constant 0 : index
    %c0_6 = arith.constant 0 : index
    %4 = vector.load %arg5[%c0_5, %c0_6] : memref<128x128xbf16, #tpu.memory_space<vmem>>, vector<128x128xbf16>
    %cst = arith.constant dense<0.000000e+00> : vector<32x128xf32>
    %5 = tpu.matmul %2, %4, %cst {dimension_numbers = #tpu.dot_dimension_numbers<[1], [0], [0], [1], [0, 0, 1, 1], [], []>} : vector<32x128xbf16>, vector<128x128xbf16>, vector<32x128xf32> -> vector<32x128xf32>
    %c0_7 = arith.constant 0 : index
    %c0_8 = arith.constant 0 : index
    %6 = vector.load %arg6[%c0_7, %c0_8] : memref<128x128xbf16, #tpu.memory_space<vmem>>, vector<128x128xbf16>
    %cst_9 = arith.constant dense<0.000000e+00> : vector<32x128xf32>
    %7 = tpu.matmul %3, %6, %cst_9 {dimension_numbers = #tpu.dot_dimension_numbers<[1], [0], [0], [1], [0, 0, 1, 1], [], []>} : vector<32x128xbf16>, vector<128x128xbf16>, vector<32x128xf32> -> vector<32x128xf32>
    %8 = arith.addf %5, %7 : vector<32x128xf32>
    %c0_10 = arith.constant 0 : index
    %c0_11 = arith.constant 0 : index
    %9 = vector.load %arg7[%c0_10, %c0_11] : memref<1x128xf32, #tpu.memory_space<vmem>>, vector<1x128xf32>
    %10 = vector.broadcast %9 : vector<1x128xf32> to vector<32x128xf32>
    %11 = arith.addf %8, %10 : vector<32x128xf32>
    %cst_12 = arith.constant 0.000000e+00 : f32
    %12 = vector.broadcast %cst_12 : f32 to vector<32x128xf32>
    %13 = arith.maximumf %11, %12 : vector<32x128xf32>
    %14 = arith.truncf %13 : vector<32x128xf32> to vector<32x128xbf16>
    %c0_13 = arith.constant 0 : index
    %c0_14 = arith.constant 0 : index
    %15 = vector.load %arg8[%c0_13, %c0_14] : memref<128x128xbf16, #tpu.memory_space<vmem>>, vector<128x128xbf16>
    %cst_15 = arith.constant dense<0.000000e+00> : vector<32x128xf32>
    %16 = tpu.matmul %14, %15, %cst_15 {dimension_numbers = #tpu.dot_dimension_numbers<[1], [0], [0], [1], [0, 0, 1, 1], [], []>} : vector<32x128xbf16>, vector<128x128xbf16>, vector<32x128xf32> -> vector<32x128xf32>
    %c0_16 = arith.constant 0 : index
    %c0_17 = arith.constant 0 : index
    %17 = vector.load %arg9[%c0_16, %c0_17] : memref<1x128xf32, #tpu.memory_space<vmem>>, vector<1x128xf32>
    %18 = vector.broadcast %17 : vector<1x128xf32> to vector<32x128xf32>
    %19 = arith.addf %16, %18 : vector<32x128xf32>
    %20 = vector.shape_cast %19 : vector<32x128xf32> to vector<2x16x128xf32>
    %cst_18 = arith.constant dense<0xFF800000> : vector<16x128xf32>
    %21 = vector.multi_reduction <maximumf>, %20, %cst_18 [0] : vector<2x16x128xf32> to vector<16x128xf32>
    %22 = vector.shape_cast %21 : vector<16x128xf32> to vector<1x16x128xf32>
    %23 = vector.broadcast %22 : vector<1x16x128xf32> to vector<2x16x128xf32>
    %24 = arith.subf %20, %23 : vector<2x16x128xf32>
    %25 = math.exp %24 : vector<2x16x128xf32>
    %cst_19 = arith.constant dense<0.000000e+00> : vector<16x128xf32>
    %26 = vector.multi_reduction <add>, %25, %cst_19 [0] : vector<2x16x128xf32> to vector<16x128xf32>
    %27 = tpu.reciprocal %26 {approx = true} : vector<16x128xf32> -> vector<16x128xf32>
    %28 = arith.extf %0 : vector<2x16x128xbf16> to vector<2x16x128xf32>
    %29 = arith.mulf %25, %28 : vector<2x16x128xf32>
    %cst_20 = arith.constant dense<0.000000e+00> : vector<16x128xf32>
    %30 = vector.multi_reduction <add>, %29, %cst_20 [0] : vector<2x16x128xf32> to vector<16x128xf32>
    %31 = arith.mulf %30, %27 : vector<16x128xf32>
    %32 = arith.truncf %31 : vector<16x128xf32> to vector<16x128xbf16>
    %c0_21 = arith.constant 0 : index
    %c0_22 = arith.constant 0 : index
    %33 = vector.load %arg15[%c0_21, %c0_22] : memref<16x128xbf16, #tpu.memory_space<vmem>>, vector<16x128xbf16>
    tpu.vector_store %arg15[%c0_21, %c0_22], %32 {strides = array<i32>} : memref<16x128xbf16, #tpu.memory_space<vmem>>, vector<16x128xbf16>,
    %c0_23 = arith.constant 0 : index
    %c0_24 = arith.constant 0 : index
    %c0_25 = arith.constant 0 : index
    %34 = vector.load %arg3[%c0_23, %c0_24, %c0_25] : memref<2x16x128xbf16, #tpu.memory_space<vmem>>, vector<2x16x128xbf16>
    %c0_26 = arith.constant 0 : index
    %c0_27 = arith.constant 0 : index
    %c0_28 = arith.constant 0 : index
    %35 = vector.load %arg4[%c0_26, %c0_27, %c0_28] : memref<2x16x128xbf16, #tpu.memory_space<vmem>>, vector<2x16x128xbf16>
    %36 = vector.shape_cast %34 : vector<2x16x128xbf16> to vector<32x128xbf16>
    %37 = vector.shape_cast %35 : vector<2x16x128xbf16> to vector<32x128xbf16>
    %c0_29 = arith.constant 0 : index
    %c0_30 = arith.constant 0 : index
    %38 = vector.load %arg10[%c0_29, %c0_30] : memref<128x128xbf16, #tpu.memory_space<vmem>>, vector<128x128xbf16>
    %cst_31 = arith.constant dense<0.000000e+00> : vector<32x128xf32>
    %39 = tpu.matmul %36, %38, %cst_31 {dimension_numbers = #tpu.dot_dimension_numbers<[1], [0], [0], [1], [0, 0, 1, 1], [], []>} : vector<32x128xbf16>, vector<128x128xbf16>, vector<32x128xf32> -> vector<32x128xf32>
    %c0_32 = arith.constant 0 : index
    %c0_33 = arith.constant 0 : index
    %40 = vector.load %arg11[%c0_32, %c0_33] : memref<128x128xbf16, #tpu.memory_space<vmem>>, vector<128x128xbf16>
    %cst_34 = arith.constant dense<0.000000e+00> : vector<32x128xf32>
    %41 = tpu.matmul %37, %40, %cst_34 {dimension_numbers = #tpu.dot_dimension_numbers<[1], [0], [0], [1], [0, 0, 1, 1], [], []>} : vector<32x128xbf16>, vector<128x128xbf16>, vector<32x128xf32> -> vector<32x128xf32>
    %42 = arith.addf %39, %41 : vector<32x128xf32>
    %c0_35 = arith.constant 0 : index
    %c0_36 = arith.constant 0 : index
    %43 = vector.load %arg12[%c0_35, %c0_36] : memref<1x128xf32, #tpu.memory_space<vmem>>, vector<1x128xf32>
    %44 = vector.broadcast %43 : vector<1x128xf32> to vector<32x128xf32>
    %45 = arith.addf %42, %44 : vector<32x128xf32>
    %cst_37 = arith.constant 0.000000e+00 : f32
    %46 = vector.broadcast %cst_37 : f32 to vector<32x128xf32>
    %47 = arith.maximumf %45, %46 : vector<32x128xf32>
    %48 = arith.truncf %47 : vector<32x128xf32> to vector<32x128xbf16>
    %c0_38 = arith.constant 0 : index
    %c0_39 = arith.constant 0 : index
    %49 = vector.load %arg13[%c0_38, %c0_39] : memref<128x128xbf16, #tpu.memory_space<vmem>>, vector<128x128xbf16>
    %cst_40 = arith.constant dense<0.000000e+00> : vector<32x128xf32>
    %50 = tpu.matmul %48, %49, %cst_40 {dimension_numbers = #tpu.dot_dimension_numbers<[1], [0], [0], [1], [0, 0, 1, 1], [], []>} : vector<32x128xbf16>, vector<128x128xbf16>, vector<32x128xf32> -> vector<32x128xf32>
    %c0_41 = arith.constant 0 : index
    %c0_42 = arith.constant 0 : index
    %51 = vector.load %arg14[%c0_41, %c0_42] : memref<1x128xf32, #tpu.memory_space<vmem>>, vector<1x128xf32>
    %52 = vector.broadcast %51 : vector<1x128xf32> to vector<32x128xf32>
    %53 = arith.addf %50, %52 : vector<32x128xf32>
    %54 = vector.shape_cast %53 : vector<32x128xf32> to vector<2x16x128xf32>
    %cst_43 = arith.constant dense<0xFF800000> : vector<16x128xf32>
    %55 = vector.multi_reduction <maximumf>, %54, %cst_43 [0] : vector<2x16x128xf32> to vector<16x128xf32>
    %56 = vector.shape_cast %55 : vector<16x128xf32> to vector<1x16x128xf32>
    %57 = vector.broadcast %56 : vector<1x16x128xf32> to vector<2x16x128xf32>
    %58 = arith.subf %54, %57 : vector<2x16x128xf32>
    %59 = math.exp %58 : vector<2x16x128xf32>
    %cst_44 = arith.constant dense<0.000000e+00> : vector<16x128xf32>
    %60 = vector.multi_reduction <add>, %59, %cst_44 [0] : vector<2x16x128xf32> to vector<16x128xf32>
    %61 = tpu.reciprocal %60 {approx = true} : vector<16x128xf32> -> vector<16x128xf32>
    %62 = arith.extf %34 : vector<2x16x128xbf16> to vector<2x16x128xf32>
    %63 = arith.mulf %59, %62 : vector<2x16x128xf32>
    %cst_45 = arith.constant dense<0.000000e+00> : vector<16x128xf32>
    %64 = vector.multi_reduction <add>, %63, %cst_45 [0] : vector<2x16x128xf32> to vector<16x128xf32>
    %65 = arith.mulf %64, %61 : vector<16x128xf32>
    %66 = arith.truncf %65 : vector<16x128xf32> to vector<16x128xbf16>
    %c0_46 = arith.constant 0 : index
    %c0_47 = arith.constant 0 : index
    %67 = vector.load %arg17[%c0_46, %c0_47] : memref<16x128xbf16, #tpu.memory_space<vmem>>, vector<16x128xbf16>
    tpu.vector_store %arg17[%c0_46, %c0_47], %66 {strides = array<i32>} : memref<16x128xbf16, #tpu.memory_space<vmem>>, vector<16x128xbf16>,
    %c0_48 = arith.constant 0 : index
    %c0_49 = arith.constant 0 : index
    %c0_50 = arith.constant 0 : index
    %68 = vector.load %arg2[%c0_48, %c0_49, %c0_50] : memref<2x16x128xbf16, #tpu.memory_space<vmem>>, vector<2x16x128xbf16>
    %cst_51 = arith.constant dense<0x7F80> : vector<16x128xbf16>
    %69 = vector.multi_reduction <minimumf>, %68, %cst_51 [0] : vector<2x16x128xbf16> to vector<16x128xbf16>
    %c0_52 = arith.constant 0 : index
    %c0_53 = arith.constant 0 : index
    %70 = vector.load %arg16[%c0_52, %c0_53] : memref<16x128xbf16, #tpu.memory_space<vmem>>, vector<16x128xbf16>
    tpu.vector_store %arg16[%c0_52, %c0_53], %69 {strides = array<i32>} : memref<16x128xbf16, #tpu.memory_space<vmem>>, vector<16x128xbf16>,
    %c0_54 = arith.constant 0 : index
    %c0_55 = arith.constant 0 : index
    %c0_56 = arith.constant 0 : index
    %71 = vector.load %arg4[%c0_54, %c0_55, %c0_56] : memref<2x16x128xbf16, #tpu.memory_space<vmem>>, vector<2x16x128xbf16>
    %cst_57 = arith.constant dense<0xFF80> : vector<16x128xbf16>
    %72 = vector.multi_reduction <maximumf>, %71, %cst_57 [0] : vector<2x16x128xbf16> to vector<16x128xbf16>
    %c0_58 = arith.constant 0 : index
    %c0_59 = arith.constant 0 : index
    %73 = vector.load %arg18[%c0_58, %c0_59] : memref<16x128xbf16, #tpu.memory_space<vmem>>, vector<16x128xbf16>
    tpu.vector_store %arg18[%c0_58, %c0_59], %72 {strides = array<i32>} : memref<16x128xbf16, #tpu.memory_space<vmem>>, vector<16x128xbf16>,
    return
  }
  func.func @transform_0(%arg0: i32) -> (i32, i32, i32) {
    %c0_i32 = arith.constant 0 : i32
    %c0_i32_0 = arith.constant 0 : i32
    %c0_i32_1 = arith.constant 0 : i32
    return %c0_i32, %arg0, %c0_i32_0 : i32, i32, i32
  }
  func.func @transform_1(%arg0: i32) -> (i32, i32, i32) {
    %c0_i32 = arith.constant 0 : i32
    %c0_i32_0 = arith.constant 0 : i32
    %c0_i32_1 = arith.constant 0 : i32
    return %c0_i32, %arg0, %c0_i32_0 : i32, i32, i32
  }
  func.func @transform_2(%arg0: i32) -> (i32, i32, i32) {
    %c0_i32 = arith.constant 0 : i32
    %c0_i32_0 = arith.constant 0 : i32
    %c0_i32_1 = arith.constant 0 : i32
    return %c0_i32, %arg0, %c0_i32_0 : i32, i32, i32
  }
  func.func @transform_3(%arg0: i32) -> (i32, i32, i32) {
    %c0_i32 = arith.constant 0 : i32
    %c0_i32_0 = arith.constant 0 : i32
    %c0_i32_1 = arith.constant 0 : i32
    return %c0_i32, %arg0, %c0_i32_0 : i32, i32, i32
  }
  func.func @transform_4(%arg0: i32) -> (i32, i32) {
    %c0_i32 = arith.constant 0 : i32
    %c0_i32_0 = arith.constant 0 : i32
    %c0_i32_1 = arith.constant 0 : i32
    return %c0_i32, %c0_i32_0 : i32, i32
  }
  func.func @transform_5(%arg0: i32) -> (i32, i32) {
    %c0_i32 = arith.constant 0 : i32
    %c0_i32_0 = arith.constant 0 : i32
    %c0_i32_1 = arith.constant 0 : i32
    return %c0_i32, %c0_i32_0 : i32, i32
  }
  func.func @transform_6(%arg0: i32) -> (i32, i32) {
    %c0_i32 = arith.constant 0 : i32
    %c0_i32_0 = arith.constant 0 : i32
    %c0_i32_1 = arith.constant 0 : i32
    return %c0_i32, %c0_i32_0 : i32, i32
  }
  func.func @transform_7(%arg0: i32) -> (i32, i32) {
    %c0_i32 = arith.constant 0 : i32
    %c0_i32_0 = arith.constant 0 : i32
    %c0_i32_1 = arith.constant 0 : i32
    return %c0_i32, %c0_i32_0 : i32, i32
  }
  func.func @transform_8(%arg0: i32) -> (i32, i32) {
    %c0_i32 = arith.constant 0 : i32
    %c0_i32_0 = arith.constant 0 : i32
    %c0_i32_1 = arith.constant 0 : i32
    return %c0_i32, %c0_i32_0 : i32, i32
  }
  func.func @transform_9(%arg0: i32) -> (i32, i32) {
    %c0_i32 = arith.constant 0 : i32
    %c0_i32_0 = arith.constant 0 : i32
    %c0_i32_1 = arith.constant 0 : i32
    return %c0_i32, %c0_i32_0 : i32, i32
  }
  func.func @transform_10(%arg0: i32) -> (i32, i32) {
    %c0_i32 = arith.constant 0 : i32
    %c0_i32_0 = arith.constant 0 : i32
    %c0_i32_1 = arith.constant 0 : i32
    return %c0_i32, %c0_i32_0 : i32, i32
  }
  func.func @transform_11(%arg0: i32) -> (i32, i32) {
    %c0_i32 = arith.constant 0 : i32
    %c0_i32_0 = arith.constant 0 : i32
    %c0_i32_1 = arith.constant 0 : i32
    return %c0_i32, %c0_i32_0 : i32, i32
  }
  func.func @transform_12(%arg0: i32) -> (i32, i32) {
    %c0_i32 = arith.constant 0 : i32
    %c0_i32_0 = arith.constant 0 : i32
    %c0_i32_1 = arith.constant 0 : i32
    return %c0_i32, %c0_i32_0 : i32, i32
  }
  func.func @transform_13(%arg0: i32) -> (i32, i32) {
    %c0_i32 = arith.constant 0 : i32
    %c0_i32_0 = arith.constant 0 : i32
    %c0_i32_1 = arith.constant 0 : i32
    return %c0_i32, %c0_i32_0 : i32, i32
  }
  func.func @transform_14(%arg0: i32) -> (i32, i32) {
    %c0_i32 = arith.constant 0 : i32
    %c0_i32_0 = arith.constant 0 : i32
    return %arg0, %c0_i32 : i32, i32
  }
  func.func @transform_15(%arg0: i32) -> (i32, i32) {
    %c0_i32 = arith.constant 0 : i32
    %c0_i32_0 = arith.constant 0 : i32
    return %arg0, %c0_i32 : i32, i32
  }
  func.func @transform_16(%arg0: i32) -> (i32, i32) {
    %c0_i32 = arith.constant 0 : i32
    %c0_i32_0 = arith.constant 0 : i32
    return %arg0, %c0_i32 : i32, i32
  }
  func.func @transform_17(%arg0: i32) -> (i32, i32) {
    %c0_i32 = arith.constant 0 : i32
    %c0_i32_0 = arith.constant 0 : i32
    return %arg0, %c0_i32 : i32, i32
  }
}

</mosaic_0001>

<bundles_post_ra>
// kernel: tpu_custom_call.1
= control target key start
LH: loop header
LB: loop body
LE: loop exit
PB: predicated region body
PF: predicated region fallthrough
CT: control target
= control target key end

     0   :  { %s1915_s0 = inlined_call_operand.hbm [shape: bf16[2,16,128], index: 0, kind: input, shape index: {}]   ;;  %s1916_s1 = inlined_call_operand.hbm [shape: bf16[2,16,128], index: 1, kind: input, shape index: {}]   ;;  %s1917_s2 = inlined_call_operand.hbm [shape: bf16[2,16,128], index: 2, kind: input, shape index: {}]   ;;  %s1918_s3 = inlined_call_operand.hbm [shape: bf16[2,16,128], index: 3, kind: input, shape index: {}]   ;;  %s1919_s4 = inlined_call_operand.hbm [shape: bf16[128,128], index: 4, kind: input, shape index: {}]   ;;  %s1920_s5 = inlined_call_operand.hbm [shape: bf16[128,128], index: 5, kind: input, shape index: {}]   ;;  %s1921_s6 = inlined_call_operand.vmem [shape: f32[1,128], index: 6, kind: input, shape index: {}]   ;;  %s1922_s7 = inlined_call_operand.hbm [shape: bf16[128,128], index: 7, kind: input, shape index: {}]   ;;  %s1923_s8 = inlined_call_operand.vmem [shape: f32[1,128], index: 8, kind: input, shape index: {}]   ;;  %s1924_s9 = inlined_call_operand.hbm [shape: bf16[128,128], index: 9, kind: input, shape index: {}]   ;;  %s1925_s10 = inlined_call_operand.hbm [shape: bf16[128,128], index: 10, kind: input, shape index: {}]   ;;  %s1926_s11 = inlined_call_operand.vmem [shape: f32[1,128], index: 11, kind: input, shape index: {}]   ;;  %s1927_s12 = inlined_call_operand.hbm [shape: bf16[128,128], index: 12, kind: input, shape index: {}]   ;;  %s1928_s13 = inlined_call_operand.vmem [shape: f32[1,128], index: 13, kind: input, shape index: {}]   ;;  %s1929_s14 = inlined_call_operand.hbm [shape: bf16[16,128], index: 14, kind: output, shape index: {0}]   ;;  %s1930_s15 = inlined_call_operand.hbm [shape: bf16[16,128], index: 15, kind: output, shape index: {1}]   ;;  %s1931_s16 = inlined_call_operand.hbm [shape: bf16[16,128], index: 16, kind: output, shape index: {2}]   ;;  %s1932_s17 = inlined_call_operand.hbm [shape: bf16[16,128], index: 17, kind: output, shape index: {3}]  }
   0x1   :  { %1933 = sst [smem:[#allocation34_spill]] %s1915_s0 }
   0x2   :  { %1934 = sst [smem:[#allocation35_spill]] %s1916_s1 }
   0x3   :  { %23 = vsyncpa [#allocation3], 0 }
   0x4   :  { %24 = vsyncpa [#allocation6], 0 }
   0x5   :  { %25 = vsyncpa [#allocation9], 0 }
   0x6   :  { %26 = vsyncpa [#allocation12], 0 }
   0x7   :  { %27 = vsyncpa [#allocation15], 0 }
   0x8   :  { %28 = vsyncpa [#allocation18], 0 }
   0x9   :  { %29 = vsyncpa [#allocation4], 0 }
   0xa   :  { %30 = vsyncpa [#allocation21], 0 }
   0xb   :  { %31 = vsyncpa [#allocation24], 0  ;;  %s1935_s26 = sld [smem:[#allocation35_spill]]  ;;  %s1713_s28 = smov [#allocation5]  }
   0xc   :  { %s51_s29 = sshll.u32 %s1713_s28, 4  ;;  %s75_s18 = sshll.u32 %s1918_s3, 4  ;;  %s52_s29 = int_to_ptr.vmem [resolvable:$true] %s51_s29  ;;  %s76_s18 = int_to_ptr.hbm [resolvable:$true] %s75_s18 }
   0xd   :  { %s1714_s19 = smov 64   ;;  %s1715_s1 = smov 4  }
   0xe   :  { %s1716_s20 = smov [#allocation8]   ;;  %s101_s24 = sshll.u32 %s1920_s5, 4  ;;  %s102_s24 = int_to_ptr.hbm [resolvable:$true] %s101_s24 }
   0xf   :  { %s77_s21 = sshll.u32 %s1716_s20, 4  ;;  %s1717_s28 = smov [#allocation11]   ;;  %s78_s21 = int_to_ptr.vmem [resolvable:$true] %s77_s21 }
  0x10   :  { %83 = dma.hbm_to_vmem [thread:$0]  %s76_s18, 256, %s78_s21, [#allocation9], %s1714_s19, %s1714_s19, %s1715_s1  }
  0x11   :  { %s49_s27 = sshll.u32 %s1935_s26, 4  ;;  %s131_s26 = sshll.u32 %s1924_s9, 4  ;;  %s50_s27 = int_to_ptr.hbm [resolvable:$true] %s49_s27  ;;  %s132_s26 = int_to_ptr.hbm [resolvable:$true] %s131_s26 }
  0x12   :  { %57 = dma.hbm_to_vmem [thread:$0]  %s50_s27, 256, %s52_s29, [#allocation6], %s1714_s19, %s1714_s19, %s1715_s1  }
  0x13   :  { %s103_s0 = sshll.u32 %s1717_s28, 4  ;;  %s1718_s27 = smov [#allocation14]   ;;  %s104_s0 = int_to_ptr.vmem [resolvable:$true] %s103_s0 }
  0x14   :  { %109 = dma.hbm_to_vmem [thread:$0]  %s102_s24, 1024, %s104_s0, [#allocation12], %s1714_s19, %s1714_s19, %s1715_s1  }
  0x15   :  { %s133_s5 = sshll.u32 %s1718_s27, 4  ;;  %s1936_s20 = sld [smem:[#allocation34_spill]]  ;;  %s134_s5 = int_to_ptr.vmem [resolvable:$true] %s133_s5 }
  0x16   :  { %139 = dma.hbm_to_vmem [thread:$0]  %s132_s26, 1024, %s134_s5, [#allocation15], %s1714_s19, %s1714_s19, %s1715_s1  }
  0x17   :  { %s62_s21 = sshll.u32 %s1917_s2, 4  ;;  %s1719_s23 = smov [#allocation2]   ;;  %s63_s21 = int_to_ptr.hbm [resolvable:$true] %s62_s21 }
  0x18   :  { %s38_s3 = sshll.u32 %s1719_s23, 4  ;;  %s1720_s24 = smov [#allocation7]   ;;  %s39_s3 = int_to_ptr.vmem [resolvable:$true] %s38_s3 }
  0x19   :  { %s64_s25 = sshll.u32 %s1720_s24, 4  ;;  %s88_s27 = sshll.u32 %s1919_s4, 4  ;;  %s65_s25 = int_to_ptr.vmem [resolvable:$true] %s64_s25  ;;  %s89_s27 = int_to_ptr.hbm [resolvable:$true] %s88_s27 }
  0x1a   :  { %70 = dma.hbm_to_vmem [thread:$0]  %s63_s21, 256, %s65_s25, [#allocation6], %s1714_s19, %s1714_s19, %s1715_s1  }
  0x1b   :  { %s36_s22 = sshll.u32 %s1936_s20, 4  ;;  %s116_s5 = sshll.u32 %s1922_s7, 4  ;;  %s37_s22 = int_to_ptr.hbm [resolvable:$true] %s36_s22  ;;  %s117_s5 = int_to_ptr.hbm [resolvable:$true] %s116_s5 }
  0x1c   :  { %44 = dma.hbm_to_vmem [thread:$0]  %s37_s22, 256, %s39_s3, [#allocation3], %s1714_s19, %s1714_s19, %s1715_s1  }
  0x1d   :  { %s1721_s29 = smov [#allocation10]   ;;  %s1722_s20 = smov [#allocation13]  }
  0x1e   :  { %s90_s30 = sshll.u32 %s1721_s29, 4  ;;  %s118_s4 = sshll.u32 %s1722_s20, 4  ;;  %s91_s30 = int_to_ptr.vmem [resolvable:$true] %s90_s30  ;;  %s119_s4 = int_to_ptr.vmem [resolvable:$true] %s118_s4 }
  0x1f   :  { %96 = dma.hbm_to_vmem [thread:$0]  %s89_s27, 1024, %s91_s30, [#allocation9], %s1714_s19, %s1714_s19, %s1715_s1  }
  0x20   :  { %s144_s18 = sshll.u32 %s1925_s10, 4  ;;  %s159_s23 = sshll.u32 %s1927_s12, 4  ;;  %s145_s18 = int_to_ptr.hbm [resolvable:$true] %s144_s18  ;;  %s160_s23 = int_to_ptr.hbm [resolvable:$true] %s159_s23 }
  0x21   :  { %124 = dma.hbm_to_vmem [thread:$0]  %s117_s5, 1024, %s119_s4, [#allocation12], %s1714_s19, %s1714_s19, %s1715_s1  }
  0x22   :  { %s1723_s3 = smov [#allocation16]   ;;  %s1724_s25 = smov [#allocation17]  }
  0x23   :  { %s146_s24 = sshll.u32 %s1723_s3, 4  ;;  %s161_s10 = sshll.u32 %s1724_s25, 4  ;;  %s147_s24 = int_to_ptr.vmem [resolvable:$true] %s146_s24  ;;  %s162_s10 = int_to_ptr.vmem [resolvable:$true] %s161_s10 }
  0x24   :  { %152 = dma.hbm_to_vmem [thread:$0]  %s145_s18, 1024, %s147_s24, [#allocation15], %s1714_s19, %s1714_s19, %s1715_s1  }
  0x25   :  { %167 = dma.hbm_to_vmem [thread:$0]  %s160_s23, 1024, %s162_s10, [#allocation18], %s1714_s19, %s1714_s19, %s1715_s1  }
  0x26   :  { %1695 = dma.done.wait [#allocation3], 256  }
  0x27   :  { %1696 = vsyncadd [#allocation3], 4294967040 }
  0x28   :  { %1697 = dma.done.wait [#allocation6], 512  }
  0x29   :  { %1698 = vsyncadd [#allocation6], 4294966784 }
  0x2a   :  { %1699 = dma.done.wait [#allocation9], 1280  }
  0x2b   :  { %1700 = vsyncadd [#allocation9], 4294966016 }
  0x2c   :  { %1701 = dma.done.wait [#allocation12], 2048  }
  0x2d   :  { %1702 = vsyncadd [#allocation12], 4294965248 }
  0x2e   :  { %1703 = dma.done.wait [#allocation15], 2048  }
  0x2f   :  { %1704 = vsyncadd [#allocation15], 4294965248 }
  0x30   :  { %1705 = dma.done.wait [#allocation18], 1024  }
  0x31   :  { %1706 = vsyncadd [#allocation18], 4294966272  ;;  %v1224_v0 = vld [vmem:[#allocation11 + $0x38] sm:$0xff]  ;;  %v1223_v2 = vld [vmem:[#allocation11 + $0x30] sm:$0xff]  ;;  %s910_s29 = sshll.u32 %s1929_s14, 4  ;;  %s1726_s4 = smov [#allocation20]   ;;  %s911_s29 = int_to_ptr.hbm [resolvable:$true] %s910_s29 }
  0x32   :  { %v1216_v1 = vld [vmem:[#allocation10 + $0x38] sm:$0xff]  ;;  %310 = vmatpush.bf16.msra.mxu0 %v1224_v0  ;;  %v1215_v3 = vld [vmem:[#allocation10 + $0x30] sm:$0xff]  ;;  %v1222_v4 = vld [vmem:[#allocation11 + $0x28] sm:$0xff]  ;;  %s921_s22 = sshll.u32 %s1726_s4, 4  ;;  %s923_s18 = sshll.u32 %s1930_s15, 4  ;;  %s922_s22 = int_to_ptr.vmem [resolvable:$true] %s921_s22  ;;  %s924_s18 = int_to_ptr.hbm [resolvable:$true] %s923_s18 }
  0x33   :  { %389 = vmatpush.bf16.msra.mxu1 %v1216_v1  ;;  %v1214_v5 = vld [vmem:[#allocation10 + $0x28] sm:$0xff]  ;;  %v1221_v6 = vld [vmem:[#allocation11 + $0x20] sm:$0xff]  ;;  %v1220_v8 = vld [vmem:[#allocation11 + $0x18] sm:$0xff]  ;;  %s949_s23 = sshll.u32 %s1932_s17, 4  ;;  %s1728_s17 = smov [#allocation22]   ;;  %s950_s23 = int_to_ptr.hbm [resolvable:$true] %s949_s23 }
  0x34   :  { %v1213_v7 = vld [vmem:[#allocation10 + $0x20] sm:$0xff]  ;;  %v1212_v9 = vld [vmem:[#allocation10 + $0x18] sm:$0xff]  ;;  %v1219_v12 = vld [vmem:[#allocation11 + $0x10] sm:$0xff]  ;;  %s934_s3 = sshll.u32 %s1728_s17, 4  ;;  %s936_s10 = sshll.u32 %s1931_s16, 4  ;;  %s935_s3 = int_to_ptr.vmem [resolvable:$true] %s934_s3  ;;  %s937_s10 = int_to_ptr.hbm [resolvable:$true] %s936_s10 }
  0x35   :  { %v1232_v10 = vld [vmem:[#allocation13 + $0x38] sm:$0xff]  ;;  %v1211_v13 = vld [vmem:[#allocation10 + $0x10] sm:$0xff]  ;;  %v1218_v16 = vld [vmem:[#allocation11 + $0x8] sm:$0xff] }
  0x36   :  { %311 = vmatpush.bf16.msra.mxu0 %v1223_v2  ;;  %v1252_v11 = vld [vmem:[#allocation16 + $0x38] sm:$0xff]  ;;  %490 = vmatpush.bf16.msra.mxu2 %v1232_v10  ;;  %v1231_v14 = vld [vmem:[#allocation13 + $0x30] sm:$0xff]  ;;  %v1210_v17 = vld [vmem:[#allocation10 + $0x8] sm:$0xff] }
  0x37   :  { %390 = vmatpush.bf16.msra.mxu1 %v1215_v3  ;;  %643 = vmatpush.bf16.msra.mxu3 %v1252_v11  ;;  %v1251_v15 = vld [vmem:[#allocation16 + $0x30] sm:$0xff]  ;;  %v1230_v18 = vld [vmem:[#allocation13 + $0x28] sm:$0xff]  ;;  %v1217_v20 = vld [vmem:[#allocation11] sm:$0xff] }
  0x38   :  { %v1250_v19 = vld [vmem:[#allocation16 + $0x28] sm:$0xff]  ;;  %v1209_v21 = vld [vmem:[#allocation10] sm:$0xff]  ;;  %v1244_v22 = vld [vmem:[#allocation14 + $0x38] sm:$0xff] }
  0x39   :  { %v1229_v23 = vld [vmem:[#allocation13 + $0x20] sm:$0xff]  ;;  %v1207_v25 = vld [vmem:[#allocation5] sm:$0xff]  ;;  %v1208_v28 = vld [vmem:[#allocation5 + $0x8] sm:$0xff] }
  0x3a   :  { %312 = vmatpush.bf16.msra.mxu0 %v1222_v4  ;;  %491 = vmatpush.bf16.msra.mxu2 %v1231_v14  ;;  %v1249_v24 = vld [vmem:[#allocation16 + $0x20] sm:$0xff]  ;;  %v1243_v27 = vld [vmem:[#allocation14 + $0x30] sm:$0xff]  ;;  %v1206_v29 = vld [vmem:[#allocation2 + $0x8] sm:$0xff] }
  0x3b   :  { %391 = vmatpush.bf16.msra.mxu1 %v1214_v5  ;;  %644 = vmatpush.bf16.msra.mxu3 %v1251_v15  ;;  %v1205_v26 = vld [vmem:[#allocation2] sm:$0xff]  ;;  %v1242_v30 = vld [vmem:[#allocation14 + $0x28] sm:$0xff]  ;;  %v1228_v31 = vld [vmem:[#allocation13 + $0x18] sm:$0xff] }
  0x3c   :  { %v1248_v32 = vld [vmem:[#allocation16 + $0x18] sm:$0xff]  ;;  %v1241_v33 = vld [vmem:[#allocation14 + $0x20] sm:$0xff]  ;;  %v1227_v34 = vld [vmem:[#allocation13 + $0x10] sm:$0xff] }
  0x3d   :  { %v1247_v35 = vld [vmem:[#allocation16 + $0x10] sm:$0xff]  ;;  %v1240_v36 = vld [vmem:[#allocation14 + $0x18] sm:$0xff]  ;;  %v1226_v37 = vld [vmem:[#allocation13 + $0x8] sm:$0xff] }
  0x3e   :  { %313 = vmatpush.bf16.msra.mxu0 %v1221_v6  ;;  %492 = vmatpush.bf16.msra.mxu2 %v1230_v18  ;;  %v1246_v38 = vld [vmem:[#allocation16 + $0x8] sm:$0xff]  ;;  %v1239_v39 = vld [vmem:[#allocation14 + $0x10] sm:$0xff]  ;;  %v1225_v40 = vld [vmem:[#allocation13] sm:$0xff] }
  0x3f   :  { %392 = vmatpush.bf16.msra.mxu1 %v1213_v7  ;;  %645 = vmatpush.bf16.msra.mxu3 %v1250_v19  ;;  %v1245_v41 = vld [vmem:[#allocation16] sm:$0xff]  ;;  %v1238_v42 = vld [vmem:[#allocation14 + $0x8] sm:$0xff]  ;;  %v1235_v43 = vld [vmem:[#allocation8] sm:$0xff] }
  0x40   :  { %v1237_v44 = vld [vmem:[#allocation14] sm:$0xff]  ;;  %v1236_v48 = vld [vmem:[#allocation8 + $0x8] sm:$0xff]  ;;  %v1259_v62 = vld [vmem:[#allocation17 + $0x30] sm:$0xff] }
  0x41   :  { %v1233_v45 = vld [vmem:[#allocation7] sm:$0xff]  ;;  %v1260_v61 = vld [vmem:[#allocation17 + $0x38] sm:$0xff]  ;;  %v1258_v0 = vld [vmem:[#allocation17 + $0x28] sm:$0xff] }
  0x42   :  { %314 = vmatpush.bf16.msra.mxu0 %v1220_v8  ;;  %493 = vmatpush.bf16.msra.mxu2 %v1229_v23  ;;  %v1331_v50 = vld [vmem:[%s1921_s6] ss:$0 sm:$0xff]  ;;  %v1234_v10 = vld [vmem:[#allocation7 + $0x8] sm:$0xff]  ;;  %v1255_v14 = vld [vmem:[#allocation17 + $0x10] sm:$0xff] }
  0x43   :  { %393 = vmatpush.bf16.msra.mxu1 %v1212_v9  ;;  %646 = vmatpush.bf16.msra.mxu3 %v1249_v24  ;;  %v1257_v6 = vld [vmem:[#allocation17 + $0x20] sm:$0xff] }
  0x46   :  { %315 = vmatpush.bf16.msra.mxu0 %v1219_v12  ;;  %494 = vmatpush.bf16.msra.mxu2 %v1228_v31 }
  0x47   :  { %394 = vmatpush.bf16.msra.mxu1 %v1211_v13  ;;  %647 = vmatpush.bf16.msra.mxu3 %v1248_v32  ;;  %v1256_v13 = vld [vmem:[#allocation17 + $0x18] sm:$0xff] }
  0x4a   :  { %316 = vmatpush.bf16.msra.mxu0 %v1218_v16  ;;  %495 = vmatpush.bf16.msra.mxu2 %v1227_v34  ;;  %v1333_v16 = vld [vmem:[%s1926_s11] ss:$0 sm:$0xff] }
  0x4b   :  { %395 = vmatpush.bf16.msra.mxu1 %v1210_v17  ;;  %648 = vmatpush.bf16.msra.mxu3 %v1247_v35 }
  0x4e   :  { %317 = vmatpush.bf16.msra.mxu0 %v1217_v20  ;;  %496 = vmatpush.bf16.msra.mxu2 %v1226_v37  ;;  %v1254_v20 = vld [vmem:[#allocation17 + $0x8] sm:$0xff] }
  0x4f   :  { %396 = vmatpush.bf16.msra.mxu1 %v1209_v21  ;;  %649 = vmatpush.bf16.msra.mxu3 %v1246_v38 }
  0x51   :  { %318 = vmatmul.bf16.vlgmr.msra.gmra.mxu0 %v1207_v25 }
  0x52   :  { %722 = vmatpush.bf16.msrb.mxu0 %v1244_v22  ;;  %397 = vmatmul.bf16.vlgmr.msra.gmra.mxu1 %v1205_v26 }
  0x53   :  { %497 = vmatpush.bf16.msra.mxu2 %v1225_v40  ;;  %650 = vmatpush.bf16.msra.mxu3 %v1245_v41 }
  0x54   :  { %823 = vmatpush.bf16.msrb.mxu1 %v1260_v61 }
  0x56   :  { %723 = vmatpush.bf16.msrb.mxu0 %v1243_v27  ;;  %651 = vmatmul.bf16.vlgmr.msra.gmra.mxu3 %v1235_v43 }
  0x57   :  { %1299 = vmatpush.bf16.msrb.mxu2 %v1244_v22  ;;  %1307 = vmatpush.bf16.msrb.mxu3 %v1260_v61  ;;  %v1253_v22 = vld [vmem:[#allocation17] sm:$0xff] }
  0x58   :  { %824 = vmatpush.bf16.msrb.mxu1 %v1259_v62 }
  0x5a   :  { %724 = vmatpush.bf16.msrb.mxu0 %v1242_v30 }
  0x5b   :  { %1300 = vmatpush.bf16.msrb.mxu2 %v1243_v27  ;;  %1308 = vmatpush.bf16.msrb.mxu3 %v1259_v62 }
  0x5c   :  { %825 = vmatpush.bf16.msrb.mxu1 %v1258_v0 }
  0x5e   :  { %725 = vmatpush.bf16.msrb.mxu0 %v1241_v33 }
  0x5f   :  { %1301 = vmatpush.bf16.msrb.mxu2 %v1242_v30  ;;  %1309 = vmatpush.bf16.msrb.mxu3 %v1258_v0 }
  0x60   :  { %826 = vmatpush.bf16.msrb.mxu1 %v1257_v6 }
  0x61   :  { %323 = vmatmul.bf16.gmra.mxu0 %v1208_v28 }
  0x62   :  { %402 = vmatmul.bf16.gmra.mxu1 %v1206_v29  ;;  %726 = vmatpush.bf16.msrb.mxu0 %v1240_v36  ;;  %v1332_v29 = vld [vmem:[%s1923_s8] ss:$0 sm:$0xff]  ;;  %s1725_s8 = smov [#allocation19]  }
  0x63   :  { %1302 = vmatpush.bf16.msrb.mxu2 %v1241_v33  ;;  %1310 = vmatpush.bf16.msrb.mxu3 %v1257_v6  ;;  %s908_s2 = sshll.u32 %s1725_s8, 4  ;;  %s909_s2 = int_to_ptr.vmem [resolvable:$true] %s908_s2 }
  0x64   :  { %827 = vmatpush.bf16.msrb.mxu1 %v1256_v13 }
  0x66   :  { %727 = vmatpush.bf16.msrb.mxu0 %v1239_v39  ;;  %656 = vmatmul.bf16.gmra.mxu3 %v1236_v48 }
  0x67   :  { %1303 = vmatpush.bf16.msrb.mxu2 %v1240_v36  ;;  %1311 = vmatpush.bf16.msrb.mxu3 %v1256_v13 }
  0x68   :  { %828 = vmatpush.bf16.msrb.mxu1 %v1255_v14 }
  0x6a   :  { %728 = vmatpush.bf16.msrb.mxu0 %v1238_v42 }
  0x6b   :  { %1304 = vmatpush.bf16.msrb.mxu2 %v1239_v39  ;;  %1312 = vmatpush.bf16.msrb.mxu3 %v1255_v14 }
  0x6c   :  { %829 = vmatpush.bf16.msrb.mxu1 %v1254_v20 }
  0x6e   :  { %729 = vmatpush.bf16.msrb.mxu0 %v1237_v44 }
  0x6f   :  { %1305 = vmatpush.bf16.msrb.mxu2 %v1238_v42  ;;  %1313 = vmatpush.bf16.msrb.mxu3 %v1254_v20 }
  0x70   :  { %830 = vmatpush.bf16.msrb.mxu1 %v1253_v22 }
  0x71   :  { %730 = vmatmul.bf16.vlgmr.msrb.gmra.mxu0 %v1233_v45 }
  0x73   :  { %1306 = vmatpush.bf16.msrb.mxu2 %v1237_v44  ;;  %1314 = vmatpush.bf16.msrb.mxu3 %v1253_v22 }
  0xce   :  { %v319_v46 = vpop.f32.mrf.mxu0 }
  0xcf   :  { %v398_v47 = vpop.f32.mrf.mxu1 }
  0xd0   :  { %v399_v49 = vadd.f32 %v398_v47, %v319_v46 }
  0xd2   :  { %v412_v53 = vadd.f32 %v1331_v50, %v399_v49 }
  0xd4   :  { %v416_v56 = vmax.f32 %v412_v53, 0.0  ;;  %v210_v53 = vld [vmem:[#allocation2] sm:$0xff]  }
  0xd5   :  { %v528_v61 = vunpack.c.h.bf16 %v210_v53 }
  0xd6   :  { %v321_v51 = vpop.f32.mrf.mxu0 }
  0xd7   :  { %v400_v52 = vpop.f32.mrf.mxu1 }
  0xd8   :  { %v401_v54 = vadd.f32 %v400_v52, %v321_v51 }
  0xd9   :  { %v652_v11 = vpop.f32.mrf.mxu3 }
  0xda   :  { %v413_v55 = vadd.f32 %v1331_v50, %v401_v54 }
  0xdc   :  { %v417_v57 = vmax.f32 %v413_v55, 0.0 }
  0xde   :  { %v420_v58 = vpack.c.bf16 %v417_v57, %v416_v56  ;;  %v324_v59 = vpop.f32.mrf.mxu0 }
  0xdf   :  { %v403_v60 = vpop.f32.mrf.mxu1 }
  0xe0   :  { %498 = vmatmul.bf16.vlgmr.msra.gmra.mxu2 %v420_v58  ;;  %v404_v63 = vadd.f32 %v403_v60, %v324_v59  ;;  %v527_v60 = vunpack.c.l.bf16 %v210_v53 }
  0xe1   :  { %v654_v18 = vpop.f32.mrf.mxu3 }
  0xe2   :  { %v414_v3 = vadd.f32 %v1331_v50, %v404_v63 }
  0xe4   :  { %v418_v7 = vmax.f32 %v414_v3, 0.0 }
  0xe6   :  { %v326_v1 = vpop.f32.mrf.mxu0 }
  0xe7   :  { %v405_v2 = vpop.f32.mrf.mxu1 }
  0xe8   :  { %v406_v4 = vadd.f32 %v405_v2, %v326_v1 }
  0xe9   :  { %v657_v44 = vpop.f32.mrf.mxu3 }
  0xea   :  { %v415_v5 = vadd.f32 %v1331_v50, %v406_v4  ;;  %v212_v50 = vld [vmem:[#allocation2 + $0x8] sm:$0xff]  }
  0xeb   :  { %v529_v56 = vunpack.c.l.bf16 %v212_v50  ;;  %v530_v57 = vunpack.c.h.bf16 %v212_v50 }
  0xec   :  { %v419_v8 = vmax.f32 %v415_v5, 0.0 }
  0xee   :  { %v421_v9 = vpack.c.bf16 %v419_v8, %v418_v7  ;;  %v731_v12 = vpop.f32.mrf.mxu0 }
  0xef   :  { %v732_v15 = vadd.f32 %v731_v12, %v652_v11 }
  0xf0   :  { %503 = vmatmul.bf16.gmra.mxu2 %v421_v9 }
  0xf1   :  { %v745_v17 = vadd.f32 %v1333_v16, %v732_v15  ;;  %v659_v58 = vpop.f32.mrf.mxu3 }
  0xf3   :  { %v749_v24 = vmax.f32 %v745_v17, 0.0  ;;  %v1297_v17 = vld [vmem:[#allocation5 + $0x8] sm:$0xff]  }
  0xf4   :  { %v1278_v22 = vunpack.c.h.bf16 %v1297_v17 }
  0xf6   :  { %v733_v19 = vpop.f32.mrf.mxu0 }
  0xf7   :  { %v734_v21 = vadd.f32 %v733_v19, %v654_v18 }
  0xf9   :  { %v746_v23 = vadd.f32 %v1333_v16, %v734_v21  ;;  %v1277_v21 = vunpack.c.l.bf16 %v1297_v17 }
  0xfb   :  { %v750_v25 = vmax.f32 %v746_v23, 0.0  ;;  %v1334_v23 = vld [vmem:[%s1928_s13] ss:$0 sm:$0xff]  ;;  %s1727_s13 = smov [#allocation23]  }
  0xfc   :  { %s947_s7 = sshll.u32 %s1727_s13, 4  ;;  %s948_s7 = int_to_ptr.vmem [resolvable:$true] %s947_s7 }
  0xfd   :  { %v753_v26 = vpack.c.bf16 %v750_v25, %v749_v24 }
  0xff   :  { %831 = vmatmul.bf16.vlgmr.msrb.gmra.mxu1 %v753_v26  ;;  %v1285_v26 = vld [vmem:[#allocation8] sm:$0xff]  }
 0x100   :  { %735 = vmatmul.bf16.vlgmr.msrb.gmra.mxu2 %v1234_v10 }
 0x163   :  { %v499_v27 = vpop.f32.mrf.mxu2 }
 0x164   :  { %v500_v31 = vadd.f32 %v1332_v29, %v499_v27  ;;  %v1298_v27 = vld [vmem:[#allocation8 + $0x8] sm:$0xff]  }
 0x16b   :  { %v501_v28 = vpop.f32.mrf.mxu2 }
 0x16c   :  { %v502_v39 = vadd.f32 %v1332_v29, %v501_v28 }
 0x173   :  { %v504_v30 = vpop.f32.mrf.mxu2 }
 0x174   :  { %v505_v32 = vadd.f32 %v1332_v29, %v504_v30  ;;  %v1286_v30 = vunpack.c.l.bf16 %v1285_v26 }
 0x176   :  { %v509_v33 = vmax.f32 %v500_v31, %v505_v32 }
 0x178   :  { %v511_v34 = vsub.f32 %v500_v31, %v509_v33  ;;  %v513_v35 = vsub.f32 %v505_v32, %v509_v33  ;;  %v1287_v31 = vunpack.c.h.bf16 %v1285_v26  ;;  %v1290_v32 = vunpack.c.l.bf16 %v1298_v27 }
 0x17a   :  { %v515_v36 = vmul.f32 1.442695, %v511_v34  ;;  %v519_v37 = vmul.f32 1.442695, %v513_v35  ;;  %v1291_v35 = vunpack.c.h.bf16 %v1298_v27 }
 0x17b   :  { %v506_v38 = vpop.f32.mrf.mxu2 }
 0x17c   :  { %v507_v40 = vadd.f32 %v1332_v29, %v506_v38  ;;  %1335 = vpow2.f32 %v515_v36  ;;  %v832_v18 = vpop.f32.mrf.mxu1  ;;  %v898_v36 = vmax.f32 %v1286_v30, %v1290_v32  ;;  %v899_v38 = vmax.f32 %v1287_v31, %v1291_v35 }
 0x17d   :  { %1337 = vpow2.f32 %v519_v37  ;;  %v833_v33 = vadd.f32 %v1334_v23, %v832_v18 }
 0x17e   :  { %v510_v41 = vmax.f32 %v502_v39, %v507_v40 }
 0x180   :  { %v512_v42 = vsub.f32 %v502_v39, %v510_v41  ;;  %v514_v43 = vsub.f32 %v507_v40, %v510_v41  ;;  %v1295_v41 = vpack.c.bf16 %v899_v38, %v898_v36 }
 0x182   :  { %v517_v45 = vmul.f32 1.442695, %v512_v42  ;;  %v521_v46 = vmul.f32 1.442695, %v514_v43  ;;  %v1336_v48 = vpop.eup %1335  ;;  %1296 = vst [vmem:[#allocation23] sm:$0xff] %v1295_v41  }
 0x183   :  { %v736_v47 = vpop.f32.mrf.mxu2  ;;  %v1338_v49 = vpop.eup %1337  ;;  %v531_v4 = vmul.f32 %v1336_v48, %v527_v60  ;;  %955 = dma.vmem_to_hbm [thread:$0]  %s948_s7, 128, %s950_s23, [#allocation24], %s1714_s19, %s1714_s19, %s1715_s1  }
 0x184   :  { %1339 = vpow2.f32 %v517_v45  ;;  %v523_v51 = vadd.f32 %v1338_v49, %v1336_v48  ;;  %v737_v52 = vadd.f32 %v736_v47, %v657_v44  ;;  %v533_v2 = vmul.f32 %v1338_v49, %v529_v56  ;;  %v834_v42 = vpop.f32.mrf.mxu1  ;;  %v545_v56 = vld [vmem:[#allocation7 + $0x8] sm:$0xff]  }
 0x185   :  { %1341 = vpow2.f32 %v521_v46  ;;  %v835_v46 = vadd.f32 %v1334_v23, %v834_v42 }
 0x186   :  { %1343 = vrcp.f32 %v523_v51  ;;  %v747_v63 = vadd.f32 %v1333_v16, %v737_v52  ;;  %v535_v10 = vadd.f32 %v533_v2, %v531_v4 }
 0x188   :  { %v751_v6 = vmax.f32 %v747_v63, 0.0  ;;  %v863_v63 = vunpack.c.h.bf16 %v545_v56 }
 0x18a   :  { %v1340_v54 = vpop.eup %1339 }
 0x18b   :  { %v1342_v55 = vpop.eup %1341  ;;  %v738_v59 = vpop.f32.mrf.mxu2  ;;  %v532_v5 = vmul.f32 %v1340_v54, %v528_v61  ;;  %v862_v61 = vunpack.c.l.bf16 %v545_v56 }
 0x18c   :  { %v524_v62 = vadd.f32 %v1342_v55, %v1340_v54  ;;  %v739_v0 = vadd.f32 %v738_v59, %v659_v58  ;;  %v534_v3 = vmul.f32 %v1342_v55, %v530_v57  ;;  %v1344_v8 = vpop.eup %1343  ;;  %v543_v55 = vld [vmem:[#allocation7] sm:$0xff]  }
 0x18d   :  { %v537_v13 = vmul.f32 %v1344_v8, %v535_v10  ;;  %v860_v60 = vunpack.c.l.bf16 %v543_v55 }
 0x18e   :  { %1345 = vrcp.f32 %v524_v62  ;;  %v748_v1 = vadd.f32 %v1333_v16, %v739_v0  ;;  %v536_v11 = vadd.f32 %v534_v3, %v532_v5  ;;  %v1272_v16 = vld [vmem:[#allocation5] sm:$0xff]   ;;  %v861_v62 = vunpack.c.h.bf16 %v543_v55 }
 0x18f   :  { %v1273_v19 = vunpack.c.l.bf16 %v1272_v16  ;;  %v1274_v20 = vunpack.c.h.bf16 %v1272_v16 }
 0x190   :  { %v752_v7 = vmax.f32 %v748_v1, 0.0 }
 0x191   :  { %v884_v24 = vmin.f32 %v1273_v19, %v1277_v21  ;;  %v885_v25 = vmin.f32 %v1274_v20, %v1278_v22 }
 0x192   :  { %v754_v9 = vpack.c.bf16 %v752_v7, %v751_v6 }
 0x193   :  { %v1282_v29 = vpack.c.bf16 %v885_v25, %v884_v24 }
 0x194   :  { %v1346_v12 = vpop.eup %1345  ;;  %836 = vmatmul.bf16.vlgmr.msrb.gmra.mxu3 %v754_v9 }
 0x195   :  { %v538_v14 = vmul.f32 %v1346_v12, %v536_v11  ;;  %1283 = vst [vmem:[#allocation20] sm:$0xff] %v1282_v29  }
 0x196   :  { %929 = dma.vmem_to_hbm [thread:$0]  %s922_s22, 128, %s924_s18, [#allocation21], %s1714_s19, %s1714_s19, %s1715_s1  }
 0x197   :  { %v1264_v15 = vpack.c.bf16 %v538_v14, %v537_v13 }
 0x199   :  { %1265 = vst [vmem:[#allocation19] sm:$0xff] %v1264_v15  }
 0x19a   :  { %916 = dma.vmem_to_hbm [thread:$0]  %s909_s2, 128, %s911_s29, [#allocation4], %s1714_s19, %s1714_s19, %s1715_s1  }
 0x217   :  { %v837_v28 = vpop.f32.mrf.mxu3 }
 0x218   :  { %v838_v34 = vadd.f32 %v1334_v23, %v837_v28 }
 0x21a   :  { %v842_v37 = vmax.f32 %v833_v33, %v838_v34 }
 0x21c   :  { %v844_v39 = vsub.f32 %v833_v33, %v842_v37  ;;  %v846_v40 = vsub.f32 %v838_v34, %v842_v37 }
 0x21e   :  { %v848_v43 = vmul.f32 1.442695, %v844_v39  ;;  %v852_v44 = vmul.f32 1.442695, %v846_v40 }
 0x21f   :  { %v839_v45 = vpop.f32.mrf.mxu3 }
 0x220   :  { %v840_v47 = vadd.f32 %v1334_v23, %v839_v45  ;;  %1347 = vpow2.f32 %v848_v43 }
 0x221   :  { %1349 = vpow2.f32 %v852_v44 }
 0x222   :  { %v843_v48 = vmax.f32 %v835_v46, %v840_v47 }
 0x224   :  { %v845_v49 = vsub.f32 %v835_v46, %v843_v48  ;;  %v847_v50 = vsub.f32 %v840_v47, %v843_v48 }
 0x226   :  { %v850_v51 = vmul.f32 1.442695, %v845_v49  ;;  %v854_v52 = vmul.f32 1.442695, %v847_v50  ;;  %v1348_v53 = vpop.eup %1347 }
 0x227   :  { %v1350_v54 = vpop.eup %1349  ;;  %v864_v1 = vmul.f32 %v1348_v53, %v860_v60 }
 0x228   :  { %1351 = vpow2.f32 %v850_v51  ;;  %v856_v57 = vadd.f32 %v1350_v54, %v1348_v53  ;;  %v866_v2 = vmul.f32 %v1350_v54, %v862_v61 }
 0x229   :  { %1353 = vpow2.f32 %v854_v52 }
 0x22a   :  { %1355 = vrcp.f32 %v856_v57  ;;  %v868_v6 = vadd.f32 %v866_v2, %v864_v1 }
 0x22e   :  { %v1352_v58 = vpop.eup %1351 }
 0x22f   :  { %v1354_v59 = vpop.eup %1353  ;;  %v865_v3 = vmul.f32 %v1352_v58, %v861_v62 }
 0x230   :  { %v857_v0 = vadd.f32 %v1354_v59, %v1352_v58  ;;  %v867_v4 = vmul.f32 %v1354_v59, %v863_v63  ;;  %v1356_v5 = vpop.eup %1355 }
 0x231   :  { %v870_v9 = vmul.f32 %v1356_v5, %v868_v6 }
 0x232   :  { %1357 = vrcp.f32 %v857_v0  ;;  %v869_v7 = vadd.f32 %v867_v4, %v865_v3 }
 0x238   :  { %v1358_v8 = vpop.eup %1357 }
 0x239   :  { %v871_v10 = vmul.f32 %v1358_v8, %v869_v7 }
 0x23b   :  { %v1269_v11 = vpack.c.bf16 %v871_v10, %v870_v9 }
 0x23d   :  { %1270 = vst [vmem:[#allocation22] sm:$0xff] %v1269_v11  }
 0x23e   :  { %942 = dma.vmem_to_hbm [thread:$0]  %s935_s3, 128, %s937_s10, [#allocation21], %s1714_s19, %s1714_s19, %s1715_s1  }
 0x23f   :  { %1707 = dma.done.wait [#allocation4], 128  }
 0x240   :  { %1708 = vsyncadd [#allocation4], 4294967168 }
 0x241   :  { %1709 = dma.done.wait [#allocation21], 256  }
 0x242   :  { %1710 = vsyncadd [#allocation21], 4294967040 }
 0x243   :  { %1711 = dma.done.wait [#allocation24], 128  }
 0x244   :  { %1712 = vsyncadd [#allocation24], 4294967168 }
 0x245   :  { %972 = vsyncpa [#allocation3], 1 }
 0x246   :  { %973 = vsyncpa [#allocation6], 1 }
 0x247   :  { %974 = vsyncpa [#allocation9], 1 }
 0x248   :  { %975 = vsyncpa [#allocation12], 1 }
 0x249   :  { %976 = vsyncpa [#allocation15], 1 }
 0x24a   :  { %977 = vsyncpa [#allocation18], 1 }
 0x24b   :  { %978 = vsyncpa [#allocation4], 1 }
 0x24c   :  { %979 = vsyncpa [#allocation21], 1 }
 0x24d   :  { %980 = vsyncpa [#allocation24], 1 }

</bundles_post_ra>
